<compile_context>
chip_gen: v6e
topology: v6e:2x2x1
jax: 0.10.0
libtpu: 0.0.40
codegen_flags: <defaults>
</compile_context>

<pallas_src>
import functools

import jax
import jax.numpy as jnp
import numpy as np
from jax.experimental import pallas as pl
from jax.experimental.pallas import tpu as pltpu


# ----------------------------------------------------------------------------
# Pallas kernel: one batch tile of the whole CharCNN.
# ----------------------------------------------------------------------------
def _charcnn_kernel(x_ref, w_ref, b_ref, o_ref, *, filter_positions, nfm):
    # x_ref: (TB, L*C)   flattened char embeddings for TB words
    # w_ref: (L*C, total_cols) banded conv weights, cols ordered (filter, pos, fmap)
    # b_ref: (1, total_cols)   biases tiled per position
    # o_ref: (TB, n_filters*nfm)
    scores = (jnp.dot(x_ref[...], w_ref[...],
                      preferred_element_type=jnp.float32)
              + b_ref[...])                                   # (TB, total_cols)

    pooled = []
    col = 0
    for n_pos in filter_positions:                            # static unroll
        acc = scores[:, col:col + nfm]
        for p in range(1, n_pos):                             # max over time
            lo = col + p * nfm
            acc = jnp.maximum(acc, scores[:, lo:lo + nfm])
        # ReLU(max(.)) == max(ReLU(.)) since ReLU is monotone.
        pooled.append(jnp.maximum(acc, 0.0))
        col += n_pos * nfm

    o_ref[...] = jnp.concatenate(pooled, axis=-1).astype(o_ref.dtype)


# ----------------------------------------------------------------------------
# Wrapper: builds the banded weight matrix once and launches the batch grid.
# ----------------------------------------------------------------------------
def char_cnn(x, conv_params, *, num_feature_maps, filter_sizes, block_b=8):
    """x: (batch_seq_len, max_word_len, char_dim) -> (batch_seq_len, n_filters*F)."""
    B, L, C = x.shape
    nfm = num_feature_maps
    x_flat = x.reshape(B, L * C).astype(jnp.float32)

    # Pack every (filter_size, position) shifted filter into one weight matrix.
    blocks_w, blocks_b, filter_positions = [], [], []
    for f in filter_sizes:
        W, b = conv_params[f]               # W: (nfm, f*C), b: (nfm,)
        P = L - f + 1                       # conv output length (stride = C)
        filter_positions.append(P)
        Wb = jnp.zeros((L * C, P * nfm), jnp.float32)
        for p in range(P):
            Wb = Wb.at[p * C:p * C + f * C, p * nfm:(p + 1) * nfm].set(W.T)
        blocks_w.append(Wb)
        blocks_b.append(jnp.tile(b, (P,)))
    W_big = jnp.concatenate(blocks_w, axis=1)                 # (L*C, total_cols)
    b_big = jnp.concatenate(blocks_b)[None, :]                # (1, total_cols)
    total_cols = W_big.shape[1]
    n_out = len(filter_sizes) * nfm

    # Pad batch to a multiple of the batch tile (deterministic, masked rows
    # are simply dropped at the end).
    TB = block_b
    Bp = ((B + TB - 1) // TB) * TB
    if Bp != B:
        x_flat = jnp.pad(x_flat, ((0, Bp - B), (0, 0)))

    kernel = functools.partial(_charcnn_kernel,
                               filter_positions=tuple(filter_positions),
                               nfm=nfm)

    out = pl.pallas_call(
        kernel,
        out_shape=jax.ShapeDtypeStruct((Bp, n_out), jnp.float32),
        grid=(Bp // TB,),
        in_specs=[
            pl.BlockSpec((TB, L * C), lambda i: (i, 0)),        # batch-tiled x
            pl.BlockSpec((L * C, total_cols), lambda i: (0, 0)),  # resident W
            pl.BlockSpec((1, total_cols), lambda i: (0, 0)),      # resident b
        ],
        out_specs=pl.BlockSpec((TB, n_out), lambda i: (i, 0)),
        compiler_params=pltpu.CompilerParams(
            dimension_semantics=("parallel",)),
    )(x_flat, W_big, b_big)

    return out[:B]


# ----------------------------------------------------------------------------
# Deterministic init matching nn.Conv1d defaults: U(-sqrt(k), sqrt(k)),
# k = 1 / (in_channels * kernel_size) = 1 / (char_dim * filter_size).
# ----------------------------------------------------------------------------
def init_conv_params(key, char_dim, num_feature_maps, filter_sizes):
    params = {}
    keys = jax.random.split(key, 2 * len(filter_sizes))
    for i, f in enumerate(filter_sizes):
        k = f * char_dim
        bound = 1.0 / float(np.sqrt(k))
        W = jax.random.uniform(keys[2 * i], (num_feature_maps, k),
                               jnp.float32, -bound, bound)
        b = jax.random.uniform(keys[2 * i + 1], (num_feature_maps,),
                               jnp.float32, -bound, bound)
        params[f] = (W, b)
    return params


# ----------------------------------------------------------------------------
# Pure-JAX reference (direct translation of the PyTorch forward).
# ----------------------------------------------------------------------------
def reference_char_cnn(x, conv_params, num_feature_maps, filter_sizes):
    B, L, C = x.shape
    x_flat = x.reshape(B, L * C)
    outs = []
    for f in filter_sizes:
        W, b = conv_params[f]               # Conv1d(1, F, C*f, stride=C)
        P = L - f + 1
        vals = []
        for p in range(P):
            window = x_flat[:, p * C:p * C + f * C]            # (B, f*C)
            vals.append(window @ W.T + b)                      # (B, F)
        conv = jnp.stack(vals, axis=-1)                        # (B, F, P)
        conv = jax.nn.relu(conv)                               # F.relu
        pooled = jnp.max(conv, axis=-1)                        # max_pool1d(full)
        outs.append(pooled)                                    # .view(-1, F)
    return jnp.concatenate(outs, axis=1)                       # torch.cat(_, 1)


if __name__ == "__main__":
    # args: char_dim=16, FILTER_SIZES=[3, 4], num_feature_maps=8
    batch_seq_len, max_word_len, char_dim = 16, 16, 16
    num_feature_maps = 8
    filter_sizes = [3, 4]

    key = jax.random.PRNGKey(0)
    kx, kp = jax.random.split(key)
    x = jax.random.normal(kx, (batch_seq_len, max_word_len, char_dim),
                          jnp.float32)
    params = init_conv_params(kp, char_dim, num_feature_maps, filter_sizes)

    out = char_cnn(x, params, num_feature_maps=num_feature_maps,
                   filter_sizes=filter_sizes, block_b=8)
    out = jax.block_until_ready(out)

    ref = reference_char_cnn(x, params, num_feature_maps, filter_sizes)
    np.testing.assert_allclose(np.asarray(out), np.asarray(ref),
                               rtol=1e-4, atol=1e-4)
    assert out.shape == (batch_seq_len, len(filter_sizes) * num_feature_maps)
    print("KERNEL_OK")
</pallas_src>

<mosaic_0001>
module attributes {stable_mosaic.version = 11 : i64} {
  func.func @_charcnn_kernel(%arg0: i32, %arg1: memref<8x256xf32, #tpu.memory_space<vmem>>, %arg2: memref<256x216xf32, #tpu.memory_space<vmem>>, %arg3: memref<1x216xf32, #tpu.memory_space<vmem>>, %arg4: memref<8x16xf32, #tpu.memory_space<vmem>>) attributes {dimension_semantics = [#tpu.dimension_semantics<parallel>], iteration_bounds = array<i64: 2>, scalar_prefetch = 0 : i64, scratch_operands = 0 : i64, tpu.core_type = #tpu.core_type<tc>, window_params = [{transform_indices = @transform_0, window_bounds = array<i64: 8, 256>}, {pipeline_mode = #tpu.pipeline_mode<synchronous>, transform_indices = @transform_1, window_bounds = array<i64: 256, 216>}, {pipeline_mode = #tpu.pipeline_mode<synchronous>, transform_indices = @transform_2, window_bounds = array<i64: 1, 216>}, {transform_indices = @transform_3, window_bounds = array<i64: 8, 16>}]} {
    %c0 = arith.constant 0 : index
    %c0_0 = arith.constant 0 : index
    %0 = vector.load %arg1[%c0, %c0_0] : memref<8x256xf32, #tpu.memory_space<vmem>>, vector<8x256xf32>
    %c0_1 = arith.constant 0 : index
    %c0_2 = arith.constant 0 : index
    %1 = vector.load %arg2[%c0_1, %c0_2] : memref<256x216xf32, #tpu.memory_space<vmem>>, vector<256x216xf32>
    %cst = arith.constant dense<0.000000e+00> : vector<8x216xf32>
    %2 = tpu.matmul %0, %1, %cst {dimension_numbers = #tpu.dot_dimension_numbers<[1], [0], [0], [1], [0, 0, 1, 1], [], []>} : vector<8x256xf32>, vector<256x216xf32>, vector<8x216xf32> -> vector<8x216xf32>
    %c0_3 = arith.constant 0 : index
    %c0_4 = arith.constant 0 : index
    %3 = vector.load %arg3[%c0_3, %c0_4] : memref<1x216xf32, #tpu.memory_space<vmem>>, vector<1x216xf32>
    %4 = vector.broadcast %3 : vector<1x216xf32> to vector<8x216xf32>
    %5 = arith.addf %2, %4 : vector<8x216xf32>
    %6 = vector.extract_strided_slice %5 {offsets = [0, 0], sizes = [8, 8], strides = [1, 1]} : vector<8x216xf32> to vector<8x8xf32>
    %7 = vector.extract_strided_slice %5 {offsets = [0, 8], sizes = [8, 8], strides = [1, 1]} : vector<8x216xf32> to vector<8x8xf32>
    %8 = arith.maximumf %6, %7 : vector<8x8xf32>
    %9 = vector.extract_strided_slice %5 {offsets = [0, 16], sizes = [8, 8], strides = [1, 1]} : vector<8x216xf32> to vector<8x8xf32>
    %10 = arith.maximumf %8, %9 : vector<8x8xf32>
    %11 = vector.extract_strided_slice %5 {offsets = [0, 24], sizes = [8, 8], strides = [1, 1]} : vector<8x216xf32> to vector<8x8xf32>
    %12 = arith.maximumf %10, %11 : vector<8x8xf32>
    %13 = vector.extract_strided_slice %5 {offsets = [0, 32], sizes = [8, 8], strides = [1, 1]} : vector<8x216xf32> to vector<8x8xf32>
    %14 = arith.maximumf %12, %13 : vector<8x8xf32>
    %15 = vector.extract_strided_slice %5 {offsets = [0, 40], sizes = [8, 8], strides = [1, 1]} : vector<8x216xf32> to vector<8x8xf32>
    %16 = arith.maximumf %14, %15 : vector<8x8xf32>
    %17 = vector.extract_strided_slice %5 {offsets = [0, 48], sizes = [8, 8], strides = [1, 1]} : vector<8x216xf32> to vector<8x8xf32>
    %18 = arith.maximumf %16, %17 : vector<8x8xf32>
    %19 = vector.extract_strided_slice %5 {offsets = [0, 56], sizes = [8, 8], strides = [1, 1]} : vector<8x216xf32> to vector<8x8xf32>
    %20 = arith.maximumf %18, %19 : vector<8x8xf32>
    %21 = vector.extract_strided_slice %5 {offsets = [0, 64], sizes = [8, 8], strides = [1, 1]} : vector<8x216xf32> to vector<8x8xf32>
    %22 = arith.maximumf %20, %21 : vector<8x8xf32>
    %23 = vector.extract_strided_slice %5 {offsets = [0, 72], sizes = [8, 8], strides = [1, 1]} : vector<8x216xf32> to vector<8x8xf32>
    %24 = arith.maximumf %22, %23 : vector<8x8xf32>
    %25 = vector.extract_strided_slice %5 {offsets = [0, 80], sizes = [8, 8], strides = [1, 1]} : vector<8x216xf32> to vector<8x8xf32>
    %26 = arith.maximumf %24, %25 : vector<8x8xf32>
    %27 = vector.extract_strided_slice %5 {offsets = [0, 88], sizes = [8, 8], strides = [1, 1]} : vector<8x216xf32> to vector<8x8xf32>
    %28 = arith.maximumf %26, %27 : vector<8x8xf32>
    %29 = vector.extract_strided_slice %5 {offsets = [0, 96], sizes = [8, 8], strides = [1, 1]} : vector<8x216xf32> to vector<8x8xf32>
    %30 = arith.maximumf %28, %29 : vector<8x8xf32>
    %31 = vector.extract_strided_slice %5 {offsets = [0, 104], sizes = [8, 8], strides = [1, 1]} : vector<8x216xf32> to vector<8x8xf32>
    %32 = arith.maximumf %30, %31 : vector<8x8xf32>
    %cst_5 = arith.constant 0.000000e+00 : f32
    %33 = vector.broadcast %cst_5 : f32 to vector<8x8xf32>
    %34 = arith.maximumf %32, %33 : vector<8x8xf32>
    %35 = vector.extract_strided_slice %5 {offsets = [0, 112], sizes = [8, 8], strides = [1, 1]} : vector<8x216xf32> to vector<8x8xf32>
    %36 = vector.extract_strided_slice %5 {offsets = [0, 120], sizes = [8, 8], strides = [1, 1]} : vector<8x216xf32> to vector<8x8xf32>
    %37 = arith.maximumf %35, %36 : vector<8x8xf32>
    %38 = vector.extract_strided_slice %5 {offsets = [0, 128], sizes = [8, 8], strides = [1, 1]} : vector<8x216xf32> to vector<8x8xf32>
    %39 = arith.maximumf %37, %38 : vector<8x8xf32>
    %40 = vector.extract_strided_slice %5 {offsets = [0, 136], sizes = [8, 8], strides = [1, 1]} : vector<8x216xf32> to vector<8x8xf32>
    %41 = arith.maximumf %39, %40 : vector<8x8xf32>
    %42 = vector.extract_strided_slice %5 {offsets = [0, 144], sizes = [8, 8], strides = [1, 1]} : vector<8x216xf32> to vector<8x8xf32>
    %43 = arith.maximumf %41, %42 : vector<8x8xf32>
    %44 = vector.extract_strided_slice %5 {offsets = [0, 152], sizes = [8, 8], strides = [1, 1]} : vector<8x216xf32> to vector<8x8xf32>
    %45 = arith.maximumf %43, %44 : vector<8x8xf32>
    %46 = vector.extract_strided_slice %5 {offsets = [0, 160], sizes = [8, 8], strides = [1, 1]} : vector<8x216xf32> to vector<8x8xf32>
    %47 = arith.maximumf %45, %46 : vector<8x8xf32>
    %48 = vector.extract_strided_slice %5 {offsets = [0, 168], sizes = [8, 8], strides = [1, 1]} : vector<8x216xf32> to vector<8x8xf32>
    %49 = arith.maximumf %47, %48 : vector<8x8xf32>
    %50 = vector.extract_strided_slice %5 {offsets = [0, 176], sizes = [8, 8], strides = [1, 1]} : vector<8x216xf32> to vector<8x8xf32>
    %51 = arith.maximumf %49, %50 : vector<8x8xf32>
    %52 = vector.extract_strided_slice %5 {offsets = [0, 184], sizes = [8, 8], strides = [1, 1]} : vector<8x216xf32> to vector<8x8xf32>
    %53 = arith.maximumf %51, %52 : vector<8x8xf32>
    %54 = vector.extract_strided_slice %5 {offsets = [0, 192], sizes = [8, 8], strides = [1, 1]} : vector<8x216xf32> to vector<8x8xf32>
    %55 = arith.maximumf %53, %54 : vector<8x8xf32>
    %56 = vector.extract_strided_slice %5 {offsets = [0, 200], sizes = [8, 8], strides = [1, 1]} : vector<8x216xf32> to vector<8x8xf32>
    %57 = arith.maximumf %55, %56 : vector<8x8xf32>
    %58 = vector.extract_strided_slice %5 {offsets = [0, 208], sizes = [8, 8], strides = [1, 1]} : vector<8x216xf32> to vector<8x8xf32>
    %59 = arith.maximumf %57, %58 : vector<8x8xf32>
    %cst_6 = arith.constant 0.000000e+00 : f32
    %60 = vector.broadcast %cst_6 : f32 to vector<8x8xf32>
    %61 = arith.maximumf %59, %60 : vector<8x8xf32>
    %62 = tpu.concatenate %34, %61 in 1 : vector<8x8xf32>, vector<8x8xf32> -> vector<8x16xf32>
    %c0_7 = arith.constant 0 : index
    %c0_8 = arith.constant 0 : index
    %63 = vector.load %arg4[%c0_7, %c0_8] : memref<8x16xf32, #tpu.memory_space<vmem>>, vector<8x16xf32>
    tpu.vector_store %arg4[%c0_7, %c0_8], %62 {strides = array<i32>} : memref<8x16xf32, #tpu.memory_space<vmem>>, vector<8x16xf32>,
    return
  }
  func.func @transform_0(%arg0: i32) -> (i32, i32) {
    %c0_i32 = arith.constant 0 : i32
    %c0_i32_0 = arith.constant 0 : i32
    return %arg0, %c0_i32 : i32, i32
  }
  func.func @transform_1(%arg0: i32) -> (i32, i32) {
    %c0_i32 = arith.constant 0 : i32
    %c0_i32_0 = arith.constant 0 : i32
    %c0_i32_1 = arith.constant 0 : i32
    return %c0_i32, %c0_i32_0 : i32, i32
  }
  func.func @transform_2(%arg0: i32) -> (i32, i32) {
    %c0_i32 = arith.constant 0 : i32
    %c0_i32_0 = arith.constant 0 : i32
    %c0_i32_1 = arith.constant 0 : i32
    return %c0_i32, %c0_i32_0 : i32, i32
  }
  func.func @transform_3(%arg0: i32) -> (i32, i32) {
    %c0_i32 = arith.constant 0 : i32
    %c0_i32_0 = arith.constant 0 : i32
    return %arg0, %c0_i32 : i32, i32
  }
}

</mosaic_0001>

<bundles_post_ra>
// kernel: tpu_custom_call.1
= control target key start
LH: loop header
LB: loop body
LE: loop exit
PB: predicated region body
PF: predicated region fallthrough
CT: control target
= control target key end

     0   :  { %8 = vsyncpa [#allocation3], 0  ;;  %s951_s0 = inlined_call_operand.vmem [shape: f32[16,256], index: 0, kind: input, shape index: {}]   ;;  %s952_s1 = inlined_call_operand.vmem [shape: f32[256,216], index: 1, kind: input, shape index: {}]   ;;  %s953_s2 = inlined_call_operand.vmem [shape: f32[1,216], index: 2, kind: input, shape index: {}]   ;;  %s954_s3 = inlined_call_operand.hbm [shape: f32[16,16], index: 3, kind: output, shape index: {}]  }
   0x1   :  { %10 = vsyncpa [#allocation3 + $0x1], 0  ;;  %s659_s12 = smov 0   ;;  %s661_s13 = smov 0  }
   0x2   :  { %s663_s14 = smov 0   ;;  %s665_s15 = smov 0  }
   0x3 LB: > { %s680_s16 = sadd.s32 4294967295, %s623_s15   ;;  %s499_s17 = sadd.s32 4294967294, %s623_s15   ;;  %s623_s15 = sphi %s665_s15, %s960_s15   ;;  %s619_s14 = sphi %s663_s14, %s959_s14   ;;  %s615_s13 = sphi %s661_s13, %s958_s13   ;;  %s611_s12 = sphi %s659_s12, %s957_s12  }
   0x4   : > { %s684_s18 = sadd.s32 1, %s623_s15   ;;  %s91_s19 = sadd.s32 1, %s619_s14 }
   0x5   : > { %s88_s20 = ssub.s32 %s623_s15, %s684_s18  ;;  %p101_p0 = scmp.ne.s32.totalorder %s619_s14, %s615_s13 }
   0x6   : > { %p89_p1 = scmp.eq.s32.totalorder %s88_s20, 0  ;;  %p102_p2 = scmp.eq.s32.totalorder %s680_s16, 1 }
   0x7   : > { %p107_p3 = scmp.ne.s32.totalorder %s615_s13, %s611_s12  ;;  %p108_p4 = scmp.eq.s32.totalorder %s499_s17, 1 }
   0x8   : > { %s695_s21 = scalar_select %p89_p1, %s619_s14, %s91_s19  }
   0x9   : > { %p697_p5 = por %p102_p2, %p101_p0  ;;  %p701_p6 = por %p108_p4, %p107_p3 }
   0xa   : > { %p502_p7 = scmp.ge.s32.totalorder %s623_s15, 1  ;;  %p140_p8 = scmp.lt.s32.totalorder %s623_s15, 3 }
   0xc   : > { %p141_p9 = pnand %p502_p7, %p140_p8 }
   0xd   : > { %p164_p10 = scmp.lt.s32.totalorder (!%p141_p9), %s680_s16, 1  ;;  %s625_s11 = smov (!%p141_p9), 120  }
   0xe   : > { %144 = sbr.rel (%p141_p9) target bundleno = 551 (0x227), region = 32  ;;  %s627_s17 = smov (!%p141_p9), 112  }
   0xf   : > { %s628_s19 = smov (!%p141_p9), 96   ;;  %s629_s20 = smov (!%p141_p9), 88  }
  0x10   : > { %s630_s24 = smov (!%p141_p9), 80   ;;  %s632_s26 = smov (!%p141_p9), 64  }
  0x11   : > { %s633_s27 = smov (!%p141_p9), 56   ;;  %s634_s28 = smov (!%p141_p9), 48  }
  0x12   : > { %s635_s29 = smov (!%p141_p9), 40   ;;  %s636_s30 = smov (!%p141_p9), 32  }
  0x13   : > { %v202_v0 = vld [vmem:[%s952_s1 + $0xf8] sm:$0xff]  ;;  %v201_v1 = vld [vmem:[%s952_s1 + $0xf0] sm:$0xff]  ;;  %v200_v2 = vld [vmem:[%s952_s1 + $0xe8] sm:$0xff]  ;;  %s165_s7 = scalar_select %p164_p10, %s680_s16, 1  ;;  %vm422_vm0 = vcmask 64512   ;;  %vm424_vm1 = vcmask 130048  }
  0x14   : > { %247 = vmatprep.subr.mxu0 %v202_v0  ;;  %v199_v3 = vld [vmem:[%s952_s1 + $0xe0] sm:$0xff]  ;;  %v198_v4 = vld [vmem:[%s952_s1 + $0xd8] sm:$0xff]  ;;  %v197_v5 = vld [vmem:[%s952_s1 + $0xd0] sm:$0xff]  ;;  %s637_s4 = smov 24   ;;  %s161_s5 = sand.u32 1, %s615_s13  }
  0x15   : > { %248 = vmatpush1.msra.mxu0 %v201_v1  ;;  %v196_v6 = vld [vmem:[%s952_s1 + $0xc8] sm:$0xff]  ;;  %v195_v7 = vld [vmem:[%s952_s1 + $0xc0] sm:$0xff]  ;;  %v194_v8 = vld [vmem:[%s952_s1 + $0xb8] sm:$0xff]  ;;  %s510_s25 = sshll.u32 %s165_s7, 4  ;;  %s503_s6 = sshll.u32 %s161_s5, 3 }
  0x16   : > { %249 = vmatprep.subr.mxu0 %v200_v2  ;;  %v193_v9 = vld [vmem:[%s952_s1 + $0xb0] sm:$0xff]  ;;  %v192_v10 = vld [vmem:[%s952_s1 + $0xa8] sm:$0xff]  ;;  %v191_v11 = vld [vmem:[%s952_s1 + $0xa0] sm:$0xff]  ;;  %s775_s8 = scalar_lea.vmem %s951_s0, %s510_s25  ;;  %v237_v2 = vlaneseq  ;;  %s631_s25 = smov 72  }
  0x17   : > { %250 = vmatpush1.msra.mxu0 %v199_v3  ;;  %v190_v12 = vld [vmem:[%s952_s1 + $0x98] sm:$0xff]  ;;  %v189_v13 = vld [vmem:[%s952_s1 + $0x90] sm:$0xff]  ;;  %v188_v14 = vld [vmem:[%s952_s1 + $0x88] sm:$0xff]  ;;  %s507_s7 = sshll.u32 %s680_s16, 7  ;;  %s163_s9 = scalar_lea.vmem [#allocation2], %s503_s6 }
  0x18   : > { %251 = vmatprep.subr.mxu0 %v198_v4  ;;  %v187_v15 = vld [vmem:[%s952_s1 + $0x80] sm:$0xff]  ;;  %v186_v16 = vld [vmem:[%s952_s1 + $0x78] sm:$0xff]  ;;  %v185_v17 = vld [vmem:[%s952_s1 + $0x70] sm:$0xff]  ;;  %v238_v3 = vshrl.u32 %v237_v2, 7  ;;  %s440_s10 = sshll.u32 %s163_s9, 4  ;;  %s638_s16 = smov [#allocation2]   ;;  %s441_s10 = int_to_ptr.vmem [resolvable:$true] %s440_s10 }
  0x19   : > { %252 = vmatpush1.msra.mxu0 %v197_v5  ;;  %v184_v18 = vld [vmem:[%s952_s1 + $0x68] sm:$0xff]  ;;  %v183_v19 = vld [vmem:[%s952_s1 + $0x60] sm:$0xff]  ;;  %v182_v20 = vld [vmem:[%s952_s1 + $0x58] sm:$0xff] }
  0x1a   : > { %253 = vmatprep.subr.mxu0 %v196_v6  ;;  %v181_v21 = vld [vmem:[%s952_s1 + $0x50] sm:$0xff]  ;;  %v180_v22 = vld [vmem:[%s952_s1 + $0x48] sm:$0xff]  ;;  %v179_v23 = vld [vmem:[%s952_s1 + $0x40] sm:$0xff]  ;;  %v239_v4 = vsub.s32 0, %v238_v3  ;;  %v243_v6 = vsub.s32 1, %v238_v3 }
  0x1b   : > { %254 = vmatpush1.msra.mxu0 %v195_v7  ;;  %v170_v24 = vld [vmem:[%s775_s8 + $0x8] sm:$0xff]  ;;  %v178_v25 = vld [vmem:[%s952_s1 + $0x38] sm:$0xff]  ;;  %v177_v26 = vld [vmem:[%s952_s1 + $0x30] sm:$0xff] }
  0x1c   : > { %255 = vmatprep.subr.mxu0 %v194_v8  ;;  %311 = vmatprep.mubr.f32.mxu0 %v170_v24  ;;  %v176_v27 = vld [vmem:[%s952_s1 + $0x28] sm:$0xff]  ;;  %v175_v28 = vld [vmem:[%s952_s1 + $0x20] sm:$0xff]  ;;  %v174_v29 = vld [vmem:[%s952_s1 + $0x18] sm:$0xff] }
  0x1d   : > { %256 = vmatpush1.msra.mxu0 %v193_v9  ;;  %v173_v30 = vld [vmem:[%s952_s1 + $0x10] sm:$0xff]  ;;  %v172_v31 = vld [vmem:[%s952_s1 + $0x8] sm:$0xff]  ;;  %v171_v32 = vld [vmem:[%s952_s1] sm:$0xff] }
  0x1e   : > { %257 = vmatprep.subr.mxu0 %v192_v10  ;;  %v234_v33 = vld [vmem:[%s952_s1 + $0x1f8] sm:$0xff]  ;;  %v233_v34 = vld [vmem:[%s952_s1 + $0x1f0] sm:$0xff]  ;;  %v232_v35 = vld [vmem:[%s952_s1 + $0x1e8] sm:$0xff] }
  0x1f   : > { %258 = vmatpush1.msra.mxu0 %v191_v11  ;;  %v231_v36 = vld [vmem:[%s952_s1 + $0x1e0] sm:$0xff]  ;;  %v230_v37 = vld [vmem:[%s952_s1 + $0x1d8] sm:$0xff]  ;;  %v229_v38 = vld [vmem:[%s952_s1 + $0x1d0] sm:$0xff] }
  0x20   : > { %259 = vmatprep.subr.mxu0 %v190_v12  ;;  %v228_v39 = vld [vmem:[%s952_s1 + $0x1c8] sm:$0xff]  ;;  %v227_v40 = vld [vmem:[%s952_s1 + $0x1c0] sm:$0xff]  ;;  %v226_v41 = vld [vmem:[%s952_s1 + $0x1b8] sm:$0xff] }
  0x21   : > { %260 = vmatpush1.msra.mxu0 %v189_v13  ;;  %v225_v42 = vld [vmem:[%s952_s1 + $0x1b0] sm:$0xff]  ;;  %v224_v43 = vld [vmem:[%s952_s1 + $0x1a8] sm:$0xff]  ;;  %v223_v44 = vld [vmem:[%s952_s1 + $0x1a0] sm:$0xff] }
  0x22   : > { %261 = vmatprep.subr.mxu0 %v188_v14  ;;  %v222_v45 = vld [vmem:[%s952_s1 + $0x198] sm:$0xff]  ;;  %v221_v46 = vld [vmem:[%s952_s1 + $0x190] sm:$0xff]  ;;  %v220_v47 = vld [vmem:[%s952_s1 + $0x188] sm:$0xff] }
  0x23   : > { %262 = vmatpush1.msra.mxu0 %v187_v15  ;;  %v219_v48 = vld [vmem:[%s952_s1 + $0x180] sm:$0xff]  ;;  %v218_v49 = vld [vmem:[%s952_s1 + $0x178] sm:$0xff]  ;;  %v217_v50 = vld [vmem:[%s952_s1 + $0x170] sm:$0xff] }
  0x24   : > { %263 = vmatprep.subr.mxu0 %v186_v16  ;;  %v216_v51 = vld [vmem:[%s952_s1 + $0x168] sm:$0xff]  ;;  %v215_v52 = vld [vmem:[%s952_s1 + $0x160] sm:$0xff]  ;;  %v214_v53 = vld [vmem:[%s952_s1 + $0x158] sm:$0xff] }
  0x25   : > { %264 = vmatpush1.msra.mxu0 %v185_v17  ;;  %v213_v54 = vld [vmem:[%s952_s1 + $0x150] sm:$0xff]  ;;  %v212_v55 = vld [vmem:[%s952_s1 + $0x148] sm:$0xff]  ;;  %v211_v56 = vld [vmem:[%s952_s1 + $0x140] sm:$0xff] }
  0x26   : > { %265 = vmatprep.subr.mxu0 %v184_v18  ;;  %v210_v57 = vld [vmem:[%s952_s1 + $0x138] sm:$0xff]  ;;  %v209_v58 = vld [vmem:[%s952_s1 + $0x130] sm:$0xff]  ;;  %v208_v59 = vld [vmem:[%s952_s1 + $0x128] sm:$0xff] }
  0x27   : > { %266 = vmatpush1.msra.mxu0 %v183_v19  ;;  %v207_v60 = vld [vmem:[%s952_s1 + $0x120] sm:$0xff]  ;;  %v206_v61 = vld [vmem:[%s952_s1 + $0x118] sm:$0xff]  ;;  %v205_v62 = vld [vmem:[%s952_s1 + $0x110] sm:$0xff] }
  0x28   : > { %267 = vmatprep.subr.mxu0 %v182_v20  ;;  %v204_v63 = vld [vmem:[%s952_s1 + $0x108] sm:$0xff]  ;;  %v203_v0 = vld [vmem:[%s952_s1 + $0x100] sm:$0xff] }
  0x29   : > { %268 = vmatpush1.msra.mxu0 %v181_v21  ;;  %v169_v1 = vld [vmem:[%s775_s8] sm:$0xff]  ;;  %s626_s8 = smov 104  }
  0x2a   : > { %269 = vmatprep.subr.mxu0 %v180_v22  ;;  %v235_v5 = vld [vmem:[%s953_s2] sm:$0x3] }
  0x2b   : > { %270 = vmatpush1.msra.mxu0 %v179_v23  ;;  %v240_v7 = vrot.slane %v235_v5, %v239_v4  ;;  %v244_v8 = vrot.slane %v235_v5, %v243_v6 }
  0x2c   : > { %271 = vmatprep.subr.mxu0 %v178_v25 }
  0x2d   : > { %272 = vmatpush1.msra.mxu0 %v177_v26 }
  0x2e   : > { %273 = vmatprep.subr.mxu0 %v176_v27 }
  0x2f   : > { %274 = vmatpush1.msra.mxu0 %v175_v28 }
  0x30   : > { %275 = vmatprep.subr.mxu0 %v174_v29 }
  0x31   : > { %276 = vmatpush1.msra.mxu0 %v173_v30 }
  0x32   : > { %277 = vmatprep.subr.mxu0 %v172_v31 }
  0x33   : > { %278 = vmatpush1.msra.mxu0 %v171_v32 }
  0x34   : > { %279 = vmatprep.subr.mxu0 %v234_v33 }
  0x35   : > { %280 = vmatpush2.msra.mxu0 %v233_v34 }
  0x36   : > { %281 = vmatprep.subr.mxu0 %v232_v35 }
  0x37   : > { %282 = vmatpush2.msra.mxu0 %v231_v36 }
  0x38   : > { %283 = vmatprep.subr.mxu0 %v230_v37 }
  0x39   : > { %284 = vmatpush2.msra.mxu0 %v229_v38 }
  0x3a   : > { %285 = vmatprep.subr.mxu0 %v228_v39 }
  0x3b   : > { %286 = vmatpush2.msra.mxu0 %v227_v40 }
  0x3c   : > { %287 = vmatprep.subr.mxu0 %v226_v41 }
  0x3d   : > { %288 = vmatpush2.msra.mxu0 %v225_v42 }
  0x3e   : > { %289 = vmatprep.subr.mxu0 %v224_v43 }
  0x3f   : > { %290 = vmatpush2.msra.mxu0 %v223_v44 }
  0x40   : > { %291 = vmatprep.subr.mxu0 %v222_v45 }
  0x41   : > { %292 = vmatpush2.msra.mxu0 %v221_v46 }
  0x42   : > { %293 = vmatprep.subr.mxu0 %v220_v47 }
  0x43   : > { %294 = vmatpush2.msra.mxu0 %v219_v48 }
  0x44   : > { %295 = vmatprep.subr.mxu0 %v218_v49 }
  0x45   : > { %296 = vmatpush2.msra.mxu0 %v217_v50 }
  0x46   : > { %297 = vmatprep.subr.mxu0 %v216_v51 }
  0x47   : > { %298 = vmatpush2.msra.mxu0 %v215_v52 }
  0x48   : > { %299 = vmatprep.subr.mxu0 %v214_v53 }
  0x49   : > { %300 = vmatpush2.msra.mxu0 %v213_v54 }
  0x4a   : > { %301 = vmatprep.subr.mxu0 %v212_v55 }
  0x4b   : > { %302 = vmatpush2.msra.mxu0 %v211_v56 }
  0x4c   : > { %303 = vmatprep.subr.mxu0 %v210_v57 }
  0x4d   : > { %304 = vmatpush2.msra.mxu0 %v209_v58 }
  0x4e   : > { %305 = vmatprep.subr.mxu0 %v208_v59 }
  0x4f   : > { %306 = vmatpush2.msra.mxu0 %v207_v60 }
  0x50   : > { %307 = vmatprep.subr.mxu0 %v206_v61 }
  0x51   : > { %308 = vmatpush2.msra.mxu0 %v205_v62 }
  0x52   : > { %309 = vmatprep.subr.mxu0 %v204_v63 }
  0x53   : > { %310 = vmatpush2.msra.mxu0 %v203_v0 }
  0x54   : > { %312 = vmatmul.mubr.f32.vlgmr.msra.gmra.mxu0 %v169_v1 }
 0x114   : > { %v313_v9 = vpop.f32.mrf.mxu0 }
 0x115   : > { %v314_v10 = vadd.f32 %v313_v9, %v240_v7 }
 0x116   : > { %v315_v11 = vpop.f32.mrf.mxu0 }
 0x117   : > { %v316_v12 = vadd.f32 %v315_v11, %v244_v8  ;;  %319 = vrot.lane.b32.xlu0 %v314_v10, %s625_s11 }
 0x119   : > { %377 = vrot.lane.b32.xlu1 %v316_v12, %s626_s8 }
 0x11b   : > { %373 = vrot.lane.b32.xlu0 %v316_v12, %s627_s17 }
 0x11d   : > { %381 = vrot.lane.b32.xlu1 %v316_v12, %s628_s19 }
 0x11f   : > { %385 = vrot.lane.b32.xlu0 %v316_v12, %s629_s20 }
 0x121   : > { %389 = vrot.lane.b32.xlu1 %v316_v12, %s630_s24 }
 0x123   : > { %393 = vrot.lane.b32.xlu0 %v316_v12, %s631_s25 }
 0x125   : > { %397 = vrot.lane.b32.xlu1 %v316_v12, %s632_s26 }
 0x127   : > { %401 = vrot.lane.b32.xlu0 %v316_v12, %s633_s27 }
 0x129   : > { %405 = vrot.lane.b32.xlu1 %v316_v12, %s634_s28 }
 0x12b   : > { %409 = vrot.lane.b32.xlu0 %v316_v12, %s635_s29 }
 0x12d   : > { %413 = vrot.lane.b32.xlu1 %v316_v12, %s636_s30 }
 0x12f   : > { %323 = vrot.lane.b32.xlu0 %v314_v10, %s627_s17  ;;  %s916_s17 = scalar_lea.hbm %s954_s3, %s507_s7 }
 0x131   : > { %327 = vrot.lane.b32.xlu1 %v314_v10, %s626_s8 }
 0x133   : > { %331 = vrot.lane.b32.xlu0 %v314_v10, %s628_s19  ;;  %s427_s19 = scalar_lea.sflag [#allocation3], %s161_s5 }
 0x135   : > { %335 = vrot.lane.b32.xlu1 %v314_v10, %s629_s20  ;;  %s563_s20 = scalar_lea.vmem %s441_s10, 128 }
 0x136   : > { %p564_p11 = scmp.ne.s32.totalorder %s441_s10, %s563_s20 }
 0x137   : > { %339 = vrot.lane.b32.xlu0 %v314_v10, %s630_s24  ;;  %s567_s24 = sshll.u32 %s638_s16, 4  ;;  %s568_s24 = int_to_ptr.vmem [resolvable:$false] %s567_s24 }
 0x138   : > { %p565_p12 = pnand %p564_p11, %p697_p5  ;;  %p570_p0 = scmp.lt.s32.totalorder %s441_s10, %s568_s24 }
 0x139   : > { %343 = vrot.lane.b32.xlu1 %v314_v10, %s631_s25  ;;  %s569_s25 = scalar_lea.vmem %s568_s24, 256 }
 0x13a   : > { %p566_p13 = pneg %p565_p12  ;;  %p571_p1 = scmp.lt.s32.totalorder %s569_s25, %s563_s20 }
 0x13b   : > { %347 = vrot.lane.b32.xlu0 %v314_v10, %s632_s26 }
 0x13c   : > { %p572_p2 = por %p571_p1, %p570_p0 }
 0x13d   : > { %351 = vrot.lane.b32.xlu1 %v314_v10, %s633_s27 }
 0x13e   : > { %p573_p3 = pnand %p572_p2, %p566_p13 }
 0x13f   : > { %355 = vrot.lane.b32.xlu0 %v314_v10, %s634_s28 }
 0x141   : > { %359 = vrot.lane.b32.xlu1 %v314_v10, %s635_s29 }
 0x143   : > { %363 = vrot.lane.b32.xlu0 %v314_v10, %s636_s30 }
 0x145   : > { %367 = vrot.lane.b32.xlu1 %v314_v10, %s637_s4 }
 0x189   : > { %v320_v13 = vpop.permute.xlu0 %319 }
 0x18a   : > { %v322_v15 = vmax.f32 %v314_v10, %v320_v13 }
 0x18b   : > { %v378_v14 = vpop.permute.xlu1 %377 }
 0x18d   : > { %v374_v16 = vpop.permute.xlu0 %373 }
 0x18e   : > { %v376_v17 = vmax.f32 %v322_v15, %v374_v16 }
 0x18f   : > { %v382_v18 = vpop.permute.xlu1 %381 }
 0x190   : > { %v380_v19 = vmax.f32 %v376_v17, %v378_v14 }
 0x191   : > { %v386_v20 = vpop.permute.xlu0 %385 }
 0x192   : > { %v384_v21 = vmax.f32 %v380_v19, %v382_v18 }
 0x193   : > { %v390_v22 = vpop.permute.xlu1 %389 }
 0x194   : > { %v388_v23 = vmax.f32 %v384_v21, %v386_v20 }
 0x195   : > { %v394_v24 = vpop.permute.xlu0 %393 }
 0x196   : > { %v392_v25 = vmax.f32 %v388_v23, %v390_v22 }
 0x197   : > { %v398_v26 = vpop.permute.xlu1 %397 }
 0x198   : > { %v396_v27 = vmax.f32 %v392_v25, %v394_v24 }
 0x199   : > { %v402_v28 = vpop.permute.xlu0 %401 }
 0x19a   : > { %v400_v29 = vmax.f32 %v396_v27, %v398_v26 }
 0x19b   : > { %v406_v30 = vpop.permute.xlu1 %405 }
 0x19c   : > { %v404_v31 = vmax.f32 %v400_v29, %v402_v28 }
 0x19d   : > { %v410_v33 = vpop.permute.xlu0 %409 }
 0x19e   : > { %v408_v32 = vmax.f32 %v404_v31, %v406_v30 }
 0x19f   : > { %v414_v35 = vpop.permute.xlu1 %413 }
 0x1a0   : > { %v412_v34 = vmax.f32 %v408_v32, %v410_v33 }
 0x1a1   : > { %v324_v38 = vpop.permute.xlu0 %323 }
 0x1a2   : > { %v416_v36 = vmax.f32 %v412_v34, %v414_v35  ;;  %v326_v39 = vmax.f32 %v322_v15, %v324_v38 }
 0x1a3   : > { %v328_v40 = vpop.permute.xlu1 %327 }
 0x1a4   : > { %v417_v37 = vmax.f32 %v416_v36, 0.0  ;;  %v330_v41 = vmax.f32 %v326_v39, %v328_v40 }
 0x1a5   : > { %v332_v42 = vpop.permute.xlu0 %331 }
 0x1a6   : > { %419 = vrot.lane.b32.xlu0 %v417_v37, %s637_s4  ;;  %v334_v43 = vmax.f32 %v330_v41, %v332_v42 }
 0x1a7   : > { %v336_v44 = vpop.permute.xlu1 %335 }
 0x1a8   : > { %v338_v45 = vmax.f32 %v334_v43, %v336_v44 }
 0x1a9   : > { %v340_v46 = vpop.permute.xlu0 %339 }
 0x1aa   : > { %v342_v47 = vmax.f32 %v338_v45, %v340_v46 }
 0x1ab   : > { %v344_v48 = vpop.permute.xlu1 %343 }
 0x1ac   : > { %v346_v49 = vmax.f32 %v342_v47, %v344_v48 }
 0x1ad   : > { %v348_v50 = vpop.permute.xlu0 %347 }
 0x1ae   : > { %v350_v51 = vmax.f32 %v346_v49, %v348_v50 }
 0x1af   : > { %v352_v52 = vpop.permute.xlu1 %351 }
 0x1b0   : > { %v354_v53 = vmax.f32 %v350_v51, %v352_v52 }
 0x1b1   : > { %v356_v54 = vpop.permute.xlu0 %355 }
 0x1b2   : > { %v358_v55 = vmax.f32 %v354_v53, %v356_v54 }
 0x1b3   : > { %v360_v56 = vpop.permute.xlu1 %359 }
 0x1b4   : > { %v362_v57 = vmax.f32 %v358_v55, %v360_v56 }
 0x1b5   : > { %v364_v58 = vpop.permute.xlu0 %363 }
 0x1b6   : > { %v366_v59 = vmax.f32 %v362_v57, %v364_v58 }
 0x1b7   : > { %v368_v60 = vpop.permute.xlu1 %367 }
 0x1b8   : > { %v370_v61 = vmax.f32 %v366_v59, %v368_v60 }
 0x1ba   : > { %v371_v62 = vmax.f32 %v370_v61, 0.0 }
 0x218   : > { %v420_v63 = vpop.permute.xlu0 %419 }
 0x219   : > { %v423_v0 = vsel %vm422_vm0, %v371_v62, %v420_v63 }
 0x21a   : > { %425 = vst.msk [vmem:[%s163_s9] sm:$0xff] %vm424_vm1, %v423_v0 }
 0x21b   : > { %576 = shalt.err (!%p573_p3)
}
 0x21c   : > { %s577_s26 = scalar_lea.hbm %s916_s17, 128  ;;  %s581_s29 = scalar_lea.hbm %s954_s3, 256 }
 0x21d   : > { %p578_p4 = scmp.ne.s32.totalorder %s916_s17, %s577_s26  ;;  %p582_p9 = scmp.lt.s32.totalorder %s916_s17, %s954_s3 }
 0x21e   : > { %p583_p10 = scmp.lt.s32.totalorder %s581_s29, %s577_s26 }
 0x21f   : > { %p579_p7 = pnand %p578_p4, %p697_p5 }
 0x220   : > { %p584_p11 = por %p583_p10, %p582_p9 }
 0x221   : > { %p580_p8 = pneg %p579_p7 }
 0x223   : > { %p585_p12 = pnand %p584_p11, %p580_p8 }
 0x225   : > { %588 = shalt.err (!%p585_p12)
}
 0x226   : > { %511 = dma.vmem_to_hbm [thread:$0]  (%p697_p5), %s441_s10, 128, %s916_s17, %s427_s19  }
 0x227 PF: > { %p517_p13 = scmp.ge.s32.totalorder %s623_s15, 2  ;;  %s452_s5 = sand.u32 1, %s611_s12  }
 0x228   : > { %s453_s6 = scalar_lea.sflag [#allocation3], %s452_s5 }
 0x229   : > { %p514_p0 = pnand %p517_p13, %p701_p6 }
 0x22b   : > { %p515_p1 = pneg %p514_p0 }
 0x22d   : > { %606 = dma.done.wait (%p515_p1), %s453_s6, 128  }
 0x22e   : > { %608 = vsyncadd (%p515_p1), %s453_s6, 4294967168  ;;  %p13_p2 = scmp.ge.s32.totalorder %s684_s18, 4   ;;  %s957_s12 = smov %s615_s13 }
 0x22f   : > { %s958_s13 = smov %s619_s14  ;;  %s959_s14 = smov %s695_s21 }
 0x230   : > { %s960_s15 = smov %s684_s18  ;;  %15 = sbr.rel (!%p13_p2) target bundleno = 3 (0x3), region = 67 }
 0x235   :  { %458 = vsyncpa [#allocation3], 1 }
 0x236   :  { %460 = vsyncpa [#allocation3 + $0x1], 1 }

</bundles_post_ra>
